<compile_context>
chip_gen: v5e
topology: v5e:2x2
jax: 0.10.0
libtpu: 0.0.40
codegen_flags: <defaults>
</compile_context>

<pallas_src>
import math
import functools

import jax
import jax.numpy as jnp
import numpy as np
from jax.experimental import pallas as pl
from jax.experimental.pallas import tpu as pltpu


# ----------------------------- Pallas kernel ---------------------------------

def hivemind_kernel(x_ref, wqkv_ref, bqkv_ref, wtail_ref, btail_ref, o_ref,
                    *, num_heads):
    """One batch-block per grid step.

    x_ref      : (Bb, S, E)   input messages (block of batch rows)
    wqkv_ref   : (E, 3E)      fused [Wq*scale | Wk | Wv], pre-transposed (x @ W)
    bqkv_ref   : (1, 3E)      fused [bq*scale | bk | bv]
    wtail_ref  : (E, O)       Wo^T @ Wf^T   (mean-pool fused tail projection)
    btail_ref  : (1, O)       bo @ Wf^T + bf
    o_ref      : (1, R0, R1)  output block; row-major view of (Bb, O)
    """
    Bb, S, E = x_ref.shape
    Dh = E // num_heads
    wd = wqkv_ref.dtype                       # MXU operand dtype (f32 or bf16)

    # ---- fused QKV projection (one MXU matmul, M = Bb*S, N = 3E) ----
    x2 = x_ref[...].reshape(Bb * S, E).astype(wd)
    qkv = (jnp.dot(x2, wqkv_ref[...], preferred_element_type=jnp.float32)
           + bqkv_ref[...])                                        # (Bb*S, 3E) f32
    q3 = qkv[:, 0 * E:1 * E].reshape(Bb, S, E)
    k3 = qkv[:, 1 * E:2 * E].reshape(Bb, S, E)
    v3 = qkv[:, 2 * E:3 * E].reshape(Bb, S, E)

    qw = q3.astype(wd)                        # cast once, reused per head

    # ---- per-head attention (lane-mask head selection, no slicing/concat) ----
    # pooled = mean over queries of the concatenated per-head context, built
    # directly via head-masked K (scores) and head-masked V (weighted sum).
    lane = jax.lax.broadcasted_iota(jnp.int32, (1, 1, E), 2)
    inv_S = jnp.float32(1.0 / S)
    pooled = jnp.zeros((Bb, E), jnp.float32)
    for h in range(num_heads):                                     # static, unrolled
        mf = ((lane >= h * Dh) & (lane < (h + 1) * Dh)).astype(jnp.float32)
        s = jnp.einsum('bqe,bke->bqk', qw, (k3 * mf).astype(wd),
                       preferred_element_type=jnp.float32)         # (Bb, S, S)
        s = s - jnp.max(s, axis=-1, keepdims=True)
        p = jnp.exp(s)
        p = p * pl.reciprocal(jnp.sum(p, axis=-1, keepdims=True), approx=True)
        # mean over the query axis BEFORE touching V (exact: mean & PV commute)
        p_bar = jnp.sum(p, axis=1) * inv_S                         # (Bb, S)
        pooled = pooled + jnp.sum(p_bar[:, :, None] * (v3 * mf), axis=1)  # (Bb, E)

    # ---- fused tail: (mean(ctx) @ Wo^T + bo) @ Wf^T + bf == pooled @ W_tail + b_tail
    out = (jnp.dot(pooled.astype(wd), wtail_ref[...],
                   preferred_element_type=jnp.float32) + btail_ref[...])   # (Bb, O)

    # one contiguous (lane-dense when possible) store per grid step
    o_ref[...] = out.reshape(o_ref.shape).astype(o_ref.dtype)


# ------------------------------ wrapper --------------------------------------

def _vmem_budget_bytes():
    """Usable VMEM budget, derived from the actual chip (v7x has 64 MiB/core)."""
    try:
        cap = int(pltpu.get_tpu_info().vmem_capacity_bytes)
    except Exception:
        cap = 64 * 1024 * 1024          # conservative fallback
    return min(cap // 2, 64 * 1024 * 1024)


def _pick_batch_block(B, S, E, min_grid=2):
    """Largest divisor of B that fits the VMEM budget and leaves >= min_grid
    grid steps (so both v7x TensorCores get work).  Prefers multiples of 8 so
    the output store can be lane-dense."""
    # rough per-batch-row f32 footprint: x (double buffered) + qkv + q/k/v views
    # + one head's scores/probs + pooled/out
    bytes_per_row = 4 * (2 * S * E + 3 * S * E + 3 * S * E + 2 * S * S + 2 * E)
    budget = _vmem_budget_bytes() // 3
    max_bb = max(1, budget // max(bytes_per_row, 1))
    target = max(1, min(max_bb, pl.cdiv(B, min_grid)))

    divisors = [d for d in range(1, target + 1) if B % d == 0]
    best = divisors[-1]
    div8 = [d for d in divisors if d % 8 == 0]
    if div8 and div8[-1] * 2 >= best:
        return div8[-1]                 # lane-dense output + nearly-max block
    return best


def hivemind_attention(x, params, num_heads, param_dtype=jnp.bfloat16):
    """x: (B, S, E) f32; params in PyTorch layout -> (B, O) f32.

    params = (in_proj_weight (3E,E), in_proj_bias (3E,),
              out_proj.weight (E,E), out_proj.bias (E,),
              fc_out.weight (O,E),  fc_out.bias (O,))
    (If the PyTorch module used nn.Identity for fc_out, pass I_E / zeros.)
    """
    B, S, E = x.shape
    w_in, b_in, w_out, b_out, w_fc, b_fc = params
    O = w_fc.shape[0]
    assert E % num_heads == 0
    Dh = E // num_heads
    scale = 1.0 / math.sqrt(Dh)

    # ---- wrapper-side weight plumbing (one-time, zero per-step cost) ----
    # fused QKV in x@W form, 1/sqrt(Dh) folded into the Q projection
    wqkv = jnp.concatenate(
        [(w_in[0 * E:1 * E] * scale).T, w_in[1 * E:2 * E].T, w_in[2 * E:3 * E].T],
        axis=1).astype(param_dtype)                              # (E, 3E)
    bqkv = jnp.concatenate(
        [b_in[0 * E:1 * E] * scale, b_in[1 * E:3 * E]]).reshape(1, 3 * E
        ).astype(jnp.float32)                                     # (1, 3E)
    # fused tail (mean-pool commutes with the linear projections, eval mode)
    w_tail = (w_out.T @ w_fc.T).astype(param_dtype)               # (E, O)
    b_tail = (b_out @ w_fc.T + b_fc).reshape(1, O).astype(jnp.float32)

    Bb = _pick_batch_block(B, S, E)
    G = B // Bb

    # lane-dense output view when possible: (G, Bb*O//128, 128) is a pure
    # row-major reshape of (B, O); otherwise fall back to (G, Bb, O).
    if (Bb * O) % 128 == 0:
        R0, R1 = (Bb * O) // 128, 128
    else:
        R0, R1 = Bb, O

    kernel = functools.partial(hivemind_kernel, num_heads=num_heads)
    const2 = lambda b: (0, 0)            # loop-invariant weights stay VMEM-resident

    out = pl.pallas_call(
        kernel,
        out_shape=jax.ShapeDtypeStruct((G, R0, R1), jnp.float32),
        grid_spec=pl.GridSpec(
            grid=(G,),
            in_specs=[
                pl.BlockSpec((Bb, S, E), lambda b: (b, 0, 0)),    # x batch block
                pl.BlockSpec((E, 3 * E), const2),                 # fused QKV W
                pl.BlockSpec((1, 3 * E), const2),                 # fused QKV b
                pl.BlockSpec((E, O), const2),                     # W_tail
                pl.BlockSpec((1, O), const2),                     # b_tail
            ],
            out_specs=pl.BlockSpec((1, R0, R1), lambda b: (b, 0, 0)),
        ),
        compiler_params=pltpu.CompilerParams(
            # >=2 grid steps guaranteed by _pick_batch_block -> both v7x TCs busy;
            # harmless on single-TC v5e/v6e.
            dimension_semantics=("parallel",),
            vmem_limit_bytes=_vmem_budget_bytes(),
        ),
    )(x, wqkv, bqkv, w_tail, b_tail)

    return out.reshape(B, O)


# --------------------------- pure-JAX reference -------------------------------

def reference_forward(x, params, num_heads):
    w_in, b_in, w_out, b_out, w_fc, b_fc = params
    B, S, E = x.shape
    Dh = E // num_heads
    qkv = x @ w_in.T + b_in                                   # (B, S, 3E)
    q, k, v = jnp.split(qkv, 3, axis=-1)

    def heads(t):
        return t.reshape(B, S, num_heads, Dh).transpose(0, 2, 1, 3)   # (B,H,S,Dh)

    q, k, v = heads(q), heads(k), heads(v)
    scores = (q / math.sqrt(Dh)) @ k.transpose(0, 1, 3, 2)    # (B, H, S, S)
    p = jax.nn.softmax(scores, axis=-1)
    ctx = (p @ v).transpose(0, 2, 1, 3).reshape(B, S, E)
    attn_out = ctx @ w_out.T + b_out
    pooled = jnp.mean(attn_out, axis=1)                       # (B, E)
    return pooled @ w_fc.T + b_fc


# ---------------------------------- main --------------------------------------

def _make_params(key, E, O):
    ks = jax.random.split(key, 6)
    w_in = 0.1 * jax.random.normal(ks[0], (3 * E, E), dtype=jnp.float32)
    b_in = 0.1 * jax.random.normal(ks[1], (3 * E,), dtype=jnp.float32)
    w_out = 0.1 * jax.random.normal(ks[2], (E, E), dtype=jnp.float32)
    b_out = 0.1 * jax.random.normal(ks[3], (E,), dtype=jnp.float32)
    w_fc = 0.1 * jax.random.normal(ks[4], (O, E), dtype=jnp.float32)
    b_fc = 0.1 * jax.random.normal(ks[5], (O,), dtype=jnp.float32)
    return (w_in, b_in, w_out, b_out, w_fc, b_fc)


if __name__ == "__main__":
    E, H, O, S = 32, 4, 16, 8          # message dim, heads, out dim, num ants
    key = jax.random.PRNGKey(0)
    kx1, kx2, kp = jax.random.split(key, 3)
    params = _make_params(kp, E, O)

    # --- small test (B=2): f32 weights, tight tolerance, grid=(2,) ---
    x_small = jax.random.normal(kx1, (2, S, E), dtype=jnp.float32)
    out_s = jax.block_until_ready(
        hivemind_attention(x_small, params, num_heads=H, param_dtype=jnp.float32))
    ref_s = jax.block_until_ready(reference_forward(x_small, params, num_heads=H))
    np.testing.assert_allclose(np.asarray(out_s), np.asarray(ref_s),
                               rtol=2e-3, atol=2e-3)

    # --- larger test (B=64): bf16 MXU operands, batch blocking + lane-dense store ---
    x_large = jax.random.normal(kx2, (64, S, E), dtype=jnp.float32)
    out_l = jax.block_until_ready(
        hivemind_attention(x_large, params, num_heads=H, param_dtype=jnp.bfloat16))
    ref_l = jax.block_until_ready(reference_forward(x_large, params, num_heads=H))
    np.testing.assert_allclose(np.asarray(out_l), np.asarray(ref_l),
                               rtol=5e-2, atol=2e-2)

    print("KERNEL_OK")
</pallas_src>

<mosaic_0001>
module attributes {stable_mosaic.version = 11 : i64} {
  func.func @hivemind_kernel(%arg0: i32, %arg1: memref<1x8x32xf32, #tpu.memory_space<vmem>>, %arg2: memref<32x96xf32, #tpu.memory_space<vmem>>, %arg3: memref<1x96xf32, #tpu.memory_space<vmem>>, %arg4: memref<32x16xf32, #tpu.memory_space<vmem>>, %arg5: memref<1x16xf32, #tpu.memory_space<vmem>>, %arg6: memref<1x1x16xf32, #tpu.memory_space<vmem>>) attributes {dimension_semantics = [#tpu.dimension_semantics<parallel>], iteration_bounds = array<i64: 2>, scalar_prefetch = 0 : i64, scratch_operands = 0 : i64, tpu.core_type = #tpu.core_type<tc>, window_params = [{transform_indices = @transform_0, window_bounds = array<i64: 1, 8, 32>}, {pipeline_mode = #tpu.pipeline_mode<synchronous>, transform_indices = @transform_1, window_bounds = array<i64: 32, 96>}, {pipeline_mode = #tpu.pipeline_mode<synchronous>, transform_indices = @transform_2, window_bounds = array<i64: 1, 96>}, {pipeline_mode = #tpu.pipeline_mode<synchronous>, transform_indices = @transform_3, window_bounds = array<i64: 32, 16>}, {pipeline_mode = #tpu.pipeline_mode<synchronous>, transform_indices = @transform_4, window_bounds = array<i64: 1, 16>}, {transform_indices = @transform_5, window_bounds = array<i64: 1, 1, 16>}]} {
    %c0 = arith.constant 0 : index
    %c0_0 = arith.constant 0 : index
    %c0_1 = arith.constant 0 : index
    %0 = vector.load %arg1[%c0, %c0_0, %c0_1] : memref<1x8x32xf32, #tpu.memory_space<vmem>>, vector<1x8x32xf32>
    %1 = vector.shape_cast %0 : vector<1x8x32xf32> to vector<8x32xf32>
    %c0_2 = arith.constant 0 : index
    %c0_3 = arith.constant 0 : index
    %2 = vector.load %arg2[%c0_2, %c0_3] : memref<32x96xf32, #tpu.memory_space<vmem>>, vector<32x96xf32>
    %cst = arith.constant dense<0.000000e+00> : vector<8x96xf32>
    %3 = tpu.matmul %1, %2, %cst {dimension_numbers = #tpu.dot_dimension_numbers<[1], [0], [0], [1], [0, 0, 1, 1], [], []>} : vector<8x32xf32>, vector<32x96xf32>, vector<8x96xf32> -> vector<8x96xf32>
    %c0_4 = arith.constant 0 : index
    %c0_5 = arith.constant 0 : index
    %4 = vector.load %arg3[%c0_4, %c0_5] : memref<1x96xf32, #tpu.memory_space<vmem>>, vector<1x96xf32>
    %5 = vector.broadcast %4 : vector<1x96xf32> to vector<8x96xf32>
    %6 = arith.addf %3, %5 : vector<8x96xf32>
    %7 = vector.extract_strided_slice %6 {offsets = [0, 0], sizes = [8, 32], strides = [1, 1]} : vector<8x96xf32> to vector<8x32xf32>
    %8 = vector.shape_cast %7 : vector<8x32xf32> to vector<1x8x32xf32>
    %9 = vector.extract_strided_slice %6 {offsets = [0, 32], sizes = [8, 32], strides = [1, 1]} : vector<8x96xf32> to vector<8x32xf32>
    %10 = vector.shape_cast %9 : vector<8x32xf32> to vector<1x8x32xf32>
    %11 = vector.extract_strided_slice %6 {offsets = [0, 64], sizes = [8, 32], strides = [1, 1]} : vector<8x96xf32> to vector<8x32xf32>
    %12 = vector.shape_cast %11 : vector<8x32xf32> to vector<1x8x32xf32>
    %13 = tpu.iota {dimensions = array<i32: 2>} : vector<1x1x32xi32>
    %cst_6 = arith.constant 0.000000e+00 : f32
    %14 = vector.broadcast %cst_6 : f32 to vector<1x32xf32>
    %c0_i32 = arith.constant 0 : i32
    %15 = vector.broadcast %c0_i32 : i32 to vector<1x1x32xi32>
    %16 = arith.cmpi sge, %13, %15 : vector<1x1x32xi32>
    %c8_i32 = arith.constant 8 : i32
    %17 = vector.broadcast %c8_i32 : i32 to vector<1x1x32xi32>
    %18 = arith.cmpi slt, %13, %17 : vector<1x1x32xi32>
    %19 = arith.andi %16, %18 : vector<1x1x32xi1>
    %20 = arith.extui %19 : vector<1x1x32xi1> to vector<1x1x32xi32>
    %21 = arith.sitofp %20 : vector<1x1x32xi32> to vector<1x1x32xf32>
    %22 = vector.broadcast %21 : vector<1x1x32xf32> to vector<1x8x32xf32>
    %23 = arith.mulf %10, %22 : vector<1x8x32xf32>
    "tpu.trace_start"() <{level = 10 : i32, message = "bqe,bke->bqk"}> : () -> ()
    %cst_7 = arith.constant dense<0.000000e+00> : vector<1x8x8xf32>
    %24 = tpu.matmul %8, %23, %cst_7 {dimension_numbers = #tpu.dot_dimension_numbers<[2], [2], [1], [1], [0, 0, 0, 1, 1, 1], [0], [0]>} : vector<1x8x32xf32>, vector<1x8x32xf32>, vector<1x8x8xf32> -> vector<1x8x8xf32>
    "tpu.trace_stop"() : () -> ()
    %cst_8 = arith.constant dense<0xFF800000> : vector<1x8xf32>
    %25 = vector.multi_reduction <maximumf>, %24, %cst_8 [2] : vector<1x8x8xf32> to vector<1x8xf32>
    %26 = vector.shape_cast %25 : vector<1x8xf32> to vector<1x8x1xf32>
    %27 = vector.broadcast %26 : vector<1x8x1xf32> to vector<1x8x8xf32>
    %28 = arith.subf %24, %27 : vector<1x8x8xf32>
    %29 = math.exp %28 : vector<1x8x8xf32>
    %cst_9 = arith.constant dense<0.000000e+00> : vector<1x8xf32>
    %30 = vector.multi_reduction <add>, %29, %cst_9 [2] : vector<1x8x8xf32> to vector<1x8xf32>
    %31 = vector.shape_cast %30 : vector<1x8xf32> to vector<1x8x1xf32>
    %32 = tpu.reciprocal %31 {approx = true} : vector<1x8x1xf32> -> vector<1x8x1xf32>
    %33 = vector.broadcast %32 : vector<1x8x1xf32> to vector<1x8x8xf32>
    %34 = arith.mulf %29, %33 : vector<1x8x8xf32>
    %cst_10 = arith.constant dense<0.000000e+00> : vector<1x8xf32>
    %35 = vector.multi_reduction <add>, %34, %cst_10 [1] : vector<1x8x8xf32> to vector<1x8xf32>
    %cst_11 = arith.constant 1.250000e-01 : f32
    %36 = vector.broadcast %cst_11 : f32 to vector<1x8xf32>
    %37 = arith.mulf %35, %36 : vector<1x8xf32>
    %38 = vector.shape_cast %37 : vector<1x8xf32> to vector<1x8x1xf32>
    %39 = vector.broadcast %21 : vector<1x1x32xf32> to vector<1x8x32xf32>
    %40 = arith.mulf %12, %39 : vector<1x8x32xf32>
    %41 = vector.broadcast %38 : vector<1x8x1xf32> to vector<1x8x32xf32>
    %42 = arith.mulf %41, %40 : vector<1x8x32xf32>
    %cst_12 = arith.constant dense<0.000000e+00> : vector<1x32xf32>
    %43 = vector.multi_reduction <add>, %42, %cst_12 [1] : vector<1x8x32xf32> to vector<1x32xf32>
    %44 = arith.addf %14, %43 : vector<1x32xf32>
    %c8_i32_13 = arith.constant 8 : i32
    %45 = vector.broadcast %c8_i32_13 : i32 to vector<1x1x32xi32>
    %46 = arith.cmpi sge, %13, %45 : vector<1x1x32xi32>
    %c16_i32 = arith.constant 16 : i32
    %47 = vector.broadcast %c16_i32 : i32 to vector<1x1x32xi32>
    %48 = arith.cmpi slt, %13, %47 : vector<1x1x32xi32>
    %49 = arith.andi %46, %48 : vector<1x1x32xi1>
    %50 = arith.extui %49 : vector<1x1x32xi1> to vector<1x1x32xi32>
    %51 = arith.sitofp %50 : vector<1x1x32xi32> to vector<1x1x32xf32>
    %52 = vector.broadcast %51 : vector<1x1x32xf32> to vector<1x8x32xf32>
    %53 = arith.mulf %10, %52 : vector<1x8x32xf32>
    "tpu.trace_start"() <{level = 10 : i32, message = "bqe,bke->bqk"}> : () -> ()
    %cst_14 = arith.constant dense<0.000000e+00> : vector<1x8x8xf32>
    %54 = tpu.matmul %8, %53, %cst_14 {dimension_numbers = #tpu.dot_dimension_numbers<[2], [2], [1], [1], [0, 0, 0, 1, 1, 1], [0], [0]>} : vector<1x8x32xf32>, vector<1x8x32xf32>, vector<1x8x8xf32> -> vector<1x8x8xf32>
    "tpu.trace_stop"() : () -> ()
    %cst_15 = arith.constant dense<0xFF800000> : vector<1x8xf32>
    %55 = vector.multi_reduction <maximumf>, %54, %cst_15 [2] : vector<1x8x8xf32> to vector<1x8xf32>
    %56 = vector.shape_cast %55 : vector<1x8xf32> to vector<1x8x1xf32>
    %57 = vector.broadcast %56 : vector<1x8x1xf32> to vector<1x8x8xf32>
    %58 = arith.subf %54, %57 : vector<1x8x8xf32>
    %59 = math.exp %58 : vector<1x8x8xf32>
    %cst_16 = arith.constant dense<0.000000e+00> : vector<1x8xf32>
    %60 = vector.multi_reduction <add>, %59, %cst_16 [2] : vector<1x8x8xf32> to vector<1x8xf32>
    %61 = vector.shape_cast %60 : vector<1x8xf32> to vector<1x8x1xf32>
    %62 = tpu.reciprocal %61 {approx = true} : vector<1x8x1xf32> -> vector<1x8x1xf32>
    %63 = vector.broadcast %62 : vector<1x8x1xf32> to vector<1x8x8xf32>
    %64 = arith.mulf %59, %63 : vector<1x8x8xf32>
    %cst_17 = arith.constant dense<0.000000e+00> : vector<1x8xf32>
    %65 = vector.multi_reduction <add>, %64, %cst_17 [1] : vector<1x8x8xf32> to vector<1x8xf32>
    %cst_18 = arith.constant 1.250000e-01 : f32
    %66 = vector.broadcast %cst_18 : f32 to vector<1x8xf32>
    %67 = arith.mulf %65, %66 : vector<1x8xf32>
    %68 = vector.shape_cast %67 : vector<1x8xf32> to vector<1x8x1xf32>
    %69 = vector.broadcast %51 : vector<1x1x32xf32> to vector<1x8x32xf32>
    %70 = arith.mulf %12, %69 : vector<1x8x32xf32>
    %71 = vector.broadcast %68 : vector<1x8x1xf32> to vector<1x8x32xf32>
    %72 = arith.mulf %71, %70 : vector<1x8x32xf32>
    %cst_19 = arith.constant dense<0.000000e+00> : vector<1x32xf32>
    %73 = vector.multi_reduction <add>, %72, %cst_19 [1] : vector<1x8x32xf32> to vector<1x32xf32>
    %74 = arith.addf %44, %73 : vector<1x32xf32>
    %c16_i32_20 = arith.constant 16 : i32
    %75 = vector.broadcast %c16_i32_20 : i32 to vector<1x1x32xi32>
    %76 = arith.cmpi sge, %13, %75 : vector<1x1x32xi32>
    %c24_i32 = arith.constant 24 : i32
    %77 = vector.broadcast %c24_i32 : i32 to vector<1x1x32xi32>
    %78 = arith.cmpi slt, %13, %77 : vector<1x1x32xi32>
    %79 = arith.andi %76, %78 : vector<1x1x32xi1>
    %80 = arith.extui %79 : vector<1x1x32xi1> to vector<1x1x32xi32>
    %81 = arith.sitofp %80 : vector<1x1x32xi32> to vector<1x1x32xf32>
    %82 = vector.broadcast %81 : vector<1x1x32xf32> to vector<1x8x32xf32>
    %83 = arith.mulf %10, %82 : vector<1x8x32xf32>
    "tpu.trace_start"() <{level = 10 : i32, message = "bqe,bke->bqk"}> : () -> ()
    %cst_21 = arith.constant dense<0.000000e+00> : vector<1x8x8xf32>
    %84 = tpu.matmul %8, %83, %cst_21 {dimension_numbers = #tpu.dot_dimension_numbers<[2], [2], [1], [1], [0, 0, 0, 1, 1, 1], [0], [0]>} : vector<1x8x32xf32>, vector<1x8x32xf32>, vector<1x8x8xf32> -> vector<1x8x8xf32>
    "tpu.trace_stop"() : () -> ()
    %cst_22 = arith.constant dense<0xFF800000> : vector<1x8xf32>
    %85 = vector.multi_reduction <maximumf>, %84, %cst_22 [2] : vector<1x8x8xf32> to vector<1x8xf32>
    %86 = vector.shape_cast %85 : vector<1x8xf32> to vector<1x8x1xf32>
    %87 = vector.broadcast %86 : vector<1x8x1xf32> to vector<1x8x8xf32>
    %88 = arith.subf %84, %87 : vector<1x8x8xf32>
    %89 = math.exp %88 : vector<1x8x8xf32>
    %cst_23 = arith.constant dense<0.000000e+00> : vector<1x8xf32>
    %90 = vector.multi_reduction <add>, %89, %cst_23 [2] : vector<1x8x8xf32> to vector<1x8xf32>
    %91 = vector.shape_cast %90 : vector<1x8xf32> to vector<1x8x1xf32>
    %92 = tpu.reciprocal %91 {approx = true} : vector<1x8x1xf32> -> vector<1x8x1xf32>
    %93 = vector.broadcast %92 : vector<1x8x1xf32> to vector<1x8x8xf32>
    %94 = arith.mulf %89, %93 : vector<1x8x8xf32>
    %cst_24 = arith.constant dense<0.000000e+00> : vector<1x8xf32>
    %95 = vector.multi_reduction <add>, %94, %cst_24 [1] : vector<1x8x8xf32> to vector<1x8xf32>
    %cst_25 = arith.constant 1.250000e-01 : f32
    %96 = vector.broadcast %cst_25 : f32 to vector<1x8xf32>
    %97 = arith.mulf %95, %96 : vector<1x8xf32>
    %98 = vector.shape_cast %97 : vector<1x8xf32> to vector<1x8x1xf32>
    %99 = vector.broadcast %81 : vector<1x1x32xf32> to vector<1x8x32xf32>
    %100 = arith.mulf %12, %99 : vector<1x8x32xf32>
    %101 = vector.broadcast %98 : vector<1x8x1xf32> to vector<1x8x32xf32>
    %102 = arith.mulf %101, %100 : vector<1x8x32xf32>
    %cst_26 = arith.constant dense<0.000000e+00> : vector<1x32xf32>
    %103 = vector.multi_reduction <add>, %102, %cst_26 [1] : vector<1x8x32xf32> to vector<1x32xf32>
    %104 = arith.addf %74, %103 : vector<1x32xf32>
    %c24_i32_27 = arith.constant 24 : i32
    %105 = vector.broadcast %c24_i32_27 : i32 to vector<1x1x32xi32>
    %106 = arith.cmpi sge, %13, %105 : vector<1x1x32xi32>
    %c32_i32 = arith.constant 32 : i32
    %107 = vector.broadcast %c32_i32 : i32 to vector<1x1x32xi32>
    %108 = arith.cmpi slt, %13, %107 : vector<1x1x32xi32>
    %109 = arith.andi %106, %108 : vector<1x1x32xi1>
    %110 = arith.extui %109 : vector<1x1x32xi1> to vector<1x1x32xi32>
    %111 = arith.sitofp %110 : vector<1x1x32xi32> to vector<1x1x32xf32>
    %112 = vector.broadcast %111 : vector<1x1x32xf32> to vector<1x8x32xf32>
    %113 = arith.mulf %10, %112 : vector<1x8x32xf32>
    "tpu.trace_start"() <{level = 10 : i32, message = "bqe,bke->bqk"}> : () -> ()
    %cst_28 = arith.constant dense<0.000000e+00> : vector<1x8x8xf32>
    %114 = tpu.matmul %8, %113, %cst_28 {dimension_numbers = #tpu.dot_dimension_numbers<[2], [2], [1], [1], [0, 0, 0, 1, 1, 1], [0], [0]>} : vector<1x8x32xf32>, vector<1x8x32xf32>, vector<1x8x8xf32> -> vector<1x8x8xf32>
    "tpu.trace_stop"() : () -> ()
    %cst_29 = arith.constant dense<0xFF800000> : vector<1x8xf32>
    %115 = vector.multi_reduction <maximumf>, %114, %cst_29 [2] : vector<1x8x8xf32> to vector<1x8xf32>
    %116 = vector.shape_cast %115 : vector<1x8xf32> to vector<1x8x1xf32>
    %117 = vector.broadcast %116 : vector<1x8x1xf32> to vector<1x8x8xf32>
    %118 = arith.subf %114, %117 : vector<1x8x8xf32>
    %119 = math.exp %118 : vector<1x8x8xf32>
    %cst_30 = arith.constant dense<0.000000e+00> : vector<1x8xf32>
    %120 = vector.multi_reduction <add>, %119, %cst_30 [2] : vector<1x8x8xf32> to vector<1x8xf32>
    %121 = vector.shape_cast %120 : vector<1x8xf32> to vector<1x8x1xf32>
    %122 = tpu.reciprocal %121 {approx = true} : vector<1x8x1xf32> -> vector<1x8x1xf32>
    %123 = vector.broadcast %122 : vector<1x8x1xf32> to vector<1x8x8xf32>
    %124 = arith.mulf %119, %123 : vector<1x8x8xf32>
    %cst_31 = arith.constant dense<0.000000e+00> : vector<1x8xf32>
    %125 = vector.multi_reduction <add>, %124, %cst_31 [1] : vector<1x8x8xf32> to vector<1x8xf32>
    %cst_32 = arith.constant 1.250000e-01 : f32
    %126 = vector.broadcast %cst_32 : f32 to vector<1x8xf32>
    %127 = arith.mulf %125, %126 : vector<1x8xf32>
    %128 = vector.shape_cast %127 : vector<1x8xf32> to vector<1x8x1xf32>
    %129 = vector.broadcast %111 : vector<1x1x32xf32> to vector<1x8x32xf32>
    %130 = arith.mulf %12, %129 : vector<1x8x32xf32>
    %131 = vector.broadcast %128 : vector<1x8x1xf32> to vector<1x8x32xf32>
    %132 = arith.mulf %131, %130 : vector<1x8x32xf32>
    %cst_33 = arith.constant dense<0.000000e+00> : vector<1x32xf32>
    %133 = vector.multi_reduction <add>, %132, %cst_33 [1] : vector<1x8x32xf32> to vector<1x32xf32>
    %134 = arith.addf %104, %133 : vector<1x32xf32>
    %c0_34 = arith.constant 0 : index
    %c0_35 = arith.constant 0 : index
    %135 = vector.load %arg4[%c0_34, %c0_35] : memref<32x16xf32, #tpu.memory_space<vmem>>, vector<32x16xf32>
    %cst_36 = arith.constant dense<0.000000e+00> : vector<1x16xf32>
    %136 = tpu.matmul %134, %135, %cst_36 {dimension_numbers = #tpu.dot_dimension_numbers<[1], [0], [0], [1], [0, 0, 1, 1], [], []>} : vector<1x32xf32>, vector<32x16xf32>, vector<1x16xf32> -> vector<1x16xf32>
    %c0_37 = arith.constant 0 : index
    %c0_38 = arith.constant 0 : index
    %137 = vector.load %arg5[%c0_37, %c0_38] : memref<1x16xf32, #tpu.memory_space<vmem>>, vector<1x16xf32>
    %138 = arith.addf %136, %137 : vector<1x16xf32>
    %139 = vector.shape_cast %138 : vector<1x16xf32> to vector<1x1x16xf32>
    %c0_39 = arith.constant 0 : index
    %c0_40 = arith.constant 0 : index
    %c0_41 = arith.constant 0 : index
    %140 = vector.load %arg6[%c0_39, %c0_40, %c0_41] : memref<1x1x16xf32, #tpu.memory_space<vmem>>, vector<1x1x16xf32>
    tpu.vector_store %arg6[%c0_39, %c0_40, %c0_41], %139 {strides = array<i32>} : memref<1x1x16xf32, #tpu.memory_space<vmem>>, vector<1x1x16xf32>,
    return
  }
  func.func @transform_0(%arg0: i32) -> (i32, i32, i32) {
    %c0_i32 = arith.constant 0 : i32
    %c0_i32_0 = arith.constant 0 : i32
    %c0_i32_1 = arith.constant 0 : i32
    return %arg0, %c0_i32, %c0_i32_0 : i32, i32, i32
  }
  func.func @transform_1(%arg0: i32) -> (i32, i32) {
    %c0_i32 = arith.constant 0 : i32
    %c0_i32_0 = arith.constant 0 : i32
    %c0_i32_1 = arith.constant 0 : i32
    return %c0_i32, %c0_i32_0 : i32, i32
  }
  func.func @transform_2(%arg0: i32) -> (i32, i32) {
    %c0_i32 = arith.constant 0 : i32
    %c0_i32_0 = arith.constant 0 : i32
    %c0_i32_1 = arith.constant 0 : i32
    return %c0_i32, %c0_i32_0 : i32, i32
  }
  func.func @transform_3(%arg0: i32) -> (i32, i32) {
    %c0_i32 = arith.constant 0 : i32
    %c0_i32_0 = arith.constant 0 : i32
    %c0_i32_1 = arith.constant 0 : i32
    return %c0_i32, %c0_i32_0 : i32, i32
  }
  func.func @transform_4(%arg0: i32) -> (i32, i32) {
    %c0_i32 = arith.constant 0 : i32
    %c0_i32_0 = arith.constant 0 : i32
    %c0_i32_1 = arith.constant 0 : i32
    return %c0_i32, %c0_i32_0 : i32, i32
  }
  func.func @transform_5(%arg0: i32) -> (i32, i32, i32) {
    %c0_i32 = arith.constant 0 : i32
    %c0_i32_0 = arith.constant 0 : i32
    %c0_i32_1 = arith.constant 0 : i32
    return %arg0, %c0_i32, %c0_i32_0 : i32, i32, i32
  }
}

</mosaic_0001>

<bundles_post_ra>
// kernel: tpu_custom_call.1
= control target key start
LH: loop header
LB: loop body
LE: loop exit
PB: predicated region body
PF: predicated region fallthrough
CT: control target
= control target key end

     0   :  { %10 = vsyncpa [#allocation3], 0  ;;  %s1030_s0 = inlined_call_operand.vmem [shape: f32[2,8,32], index: 0, kind: input, shape index: {}]   ;;  %s1031_s1 = inlined_call_operand.vmem [shape: f32[32,96], index: 1, kind: input, shape index: {}]   ;;  %s1032_s2 = inlined_call_operand.vmem [shape: f32[1,96], index: 2, kind: input, shape index: {}]   ;;  %s1033_s3 = inlined_call_operand.vmem [shape: f32[32,16], index: 3, kind: input, shape index: {}]   ;;  %s1034_s4 = inlined_call_operand.vmem [shape: f32[1,16], index: 4, kind: input, shape index: {}]   ;;  %s1035_s5 = inlined_call_operand.hbm [shape: f32[2,1,16], index: 5, kind: output, shape index: {}]  }
   0x1   :  { %12 = vsyncpa [#allocation3 + $0x1], 0  ;;  %s848_s18 = smov 0   ;;  %s850_s19 = smov 0  }
   0x2   :  { %s852_s20 = smov 0   ;;  %s854_s21 = smov 0  }
   0x3 LB: > { %s869_s22 = sadd.s32 4294967295, %s812_s21   ;;  %s651_s23 = sadd.s32 4294967294, %s812_s21   ;;  %s812_s21 = sphi %s854_s21, %s1041_s21   ;;  %s808_s20 = sphi %s852_s20, %s1040_s20   ;;  %s804_s19 = sphi %s850_s19, %s1039_s19   ;;  %s800_s18 = sphi %s848_s18, %s1038_s18  }
   0x4   : > { %s873_s24 = sadd.s32 1, %s812_s21   ;;  %s135_s25 = sadd.s32 1, %s808_s20 }
   0x5   : > { %s132_s26 = ssub.s32 %s812_s21, %s873_s24  ;;  %p145_p0 = scmp.ne.s32.totalorder %s808_s20, %s804_s19 }
   0x6   : > { %p133_p1 = scmp.eq.s32.totalorder %s132_s26, 0  ;;  %p146_p2 = scmp.eq.s32.totalorder %s869_s22, 1 }
   0x7   : > { %p151_p3 = scmp.ne.s32.totalorder %s804_s19, %s800_s18  ;;  %p152_p4 = scmp.eq.s32.totalorder %s651_s23, 1 }
   0x8   : > { %s884_s27 = scalar_select %p133_p1, %s808_s20, %s135_s25  }
   0x9   : > { %p886_p5 = por %p146_p2, %p145_p0  ;;  %p890_p6 = por %p152_p4, %p151_p3 }
   0xa   : > { %p654_p7 = scmp.ge.s32.totalorder %s812_s21, 1  ;;  %p189_p8 = scmp.lt.s32.totalorder %s812_s21, 3 }
   0xc   : > { %p190_p9 = pnand %p654_p7, %p189_p8 }
   0xd   : > { %p215_p10 = scmp.lt.s32.totalorder (!%p190_p9), %s869_s22, 1  ;;  %s815_s23 = smov (!%p190_p9), 32  }
   0xe   : > { %193 = sbr.rel (%p190_p9) target bundleno = 1070 (0x42e), region = 40  ;;  %s816_s30 = smov (!%p190_p9), 96  }
   0xf   : > { %s817_s6 = smov (!%p190_p9), 64   ;;  %s213_s15 = sand.u32 (!%p190_p9), 1, %s804_s19  }
  0x10   : > { %s770_s12 = scalar_lea.hbm (!%p190_p9), %s1035_s5, 2 }
  0x13   : > { %v223_v0 = vld [vmem:[%s1031_s1 + $0x18] sm:$0xff]  ;;  %v222_v1 = vld [vmem:[%s1031_s1 + $0x10] sm:$0xff]  ;;  %v252_v2 = vlaneseq  ;;  %v221_v3 = vld [vmem:[%s1031_s1 + $0x8] sm:$0xff]  ;;  %s216_s11 = scalar_select %p215_p10, %s869_s22, 1  ;;  %vm228_vm0 = vcmask 261120   ;;  %v814_v6 = vmov 0.0  }
  0x14   : > { %244 = vmatpush.msra.mxu0 %v223_v0  ;;  %v220_v5 = vld [vmem:[%s1031_s1] sm:$0xff]  ;;  %vm292_vm11 = vcmask 64512   ;;  %vm323_vm12 = vcmask 785920   ;;  %vm581_vm13 = vcmask 122880  }
  0x15   : > { %v253_v4 = vand.u32 127, %v252_v2  ;;  %s655_s14 = sshll.u32 %s216_s11, 3  ;;  %v733_v15 = vld [vmem:[%s1032_s2] ss:$0 sm:$0xff]  ;;  %v313_v59 = vshrl.u32 %v252_v2, 7 }
  0x16   : > { %245 = vmatpush.msra.mxu0 %v222_v1  ;;  %s218_s17 = scalar_lea.vmem %s1030_s0, %s655_s14 }
  0x17   : > { %vm255_vm1 = vcmp.lt.s32.totalorder %v253_v4, 8  ;;  %vm332_vm2 = vcmp.ge.s32.totalorder %v253_v4, 8  ;;  %vm333_vm3 = vcmp.lt.s32.totalorder %v253_v4, 16  ;;  %vm478_vm4 = vcmp.ge.s32.totalorder %v253_v4, 24  ;;  %v219_v8 = vld [vmem:[%s218_s17] sm:$0xff]  ;;  %725 = vset.pattern.permute.xlu0 %v313_v59  ;;  %731 = vset.pattern.permute.xlu1 %v313_v59 }
  0x18   : > { %246 = vmatpush.msra.mxu0 %v221_v3  ;;  %v914_v7 = vsel %vm255_vm1, 1.0, %v814_v6  ;;  %vm334_vm5 = vmand %vm332_vm2, %vm333_vm3  ;;  %vm479_vm6 = vcmp.lt.s32.totalorder %v253_v4, 32  ;;  %vm405_vm7 = vcmp.ge.s32.totalorder %v253_v4, 16  ;;  %vm406_vm8 = vcmp.lt.s32.totalorder %v253_v4, 24  ;;  %732 = vset.pattern.permute.xlu2 %v313_v59  ;;  %v551_v59 = vld [vmem:[%s1033_s3] sm:$0xff] }
  0x19   : > { %v916_v9 = vsel %vm334_vm5, 1.0, %v814_v6  ;;  %vm480_vm9 = vmand %vm478_vm4, %vm479_vm6 }
  0x1a   : > { %247 = vmatpush.msra.mxu0 %v220_v5  ;;  %v720_v10 = vpack.i.bf16 %v916_v9, %v914_v7  ;;  %v715_v11 = vpack.i.bf16 %v914_v7, %v916_v9  ;;  %v922_v12 = vsel %vm480_vm9, 1.0, %v814_v6  ;;  %vm407_vm10 = vmand %vm405_vm7, %vm406_vm8 }
  0x1b   : > { %656 = vmatmul.msk.f32.vlgmr.msra.gmra.mxu0 %vm228_vm0, %v219_v8  ;;  %484 = vrot.lane.b32.xlu1 %v922_v12, %s815_s23  ;;  %v926_v13 = vsel %vm407_vm10, 1.0, %v814_v6 }
  0x1c   : > { %716 = vrot.lane.b32.xlu0 %v715_v11, %s815_s23  ;;  %v726_v14 = vpack.i.bf16 %v922_v12, %v926_v13 }
  0x24   : > { %411 = vrot.lane.b32.xlu0 %v926_v13, %s815_s23  ;;  %s592_s23 = scalar_lea.hbm %s1035_s5, %s869_s22 }
  0x25   : > { %s596_s8 = sshll.u32 %s592_s23, 4  ;;  %s597_s8 = int_to_ptr.hbm [resolvable:$true] %s596_s8 }
  0x26   : > { %s764_s9 = sshra.s32 %s597_s8, 4  ;;  %s765_s9 = int_to_ptr.hbm [resolvable:$true] %s764_s9 }
  0x27   : > { %s766_s10 = scalar_lea.hbm %s765_s9, 1  ;;  %p771_p0 = scmp.lt.s32.totalorder %s765_s9, %s1035_s5 }
  0x28   : > { %p767_p11 = scmp.ne.s32.totalorder %s765_s9, %s766_s10  ;;  %p772_p1 = scmp.lt.s32.totalorder %s770_s12, %s766_s10 }
  0x2a   : > { %p768_p12 = pnand %p767_p11, %p886_p5  ;;  %p773_p2 = por %p772_p1, %p771_p0 }
  0x2c   : > { %p769_p13 = pneg %p768_p12 }
  0x2e   : > { %p774_p3 = pnand %p773_p2, %p769_p13 }
  0x8d   : > { %v485_v20 = vpop.permute.xlu1 %484 }
  0x8e   : > { %v717_v16 = vpop.permute.xlu0 %716 }
  0x8f   : > { %v719_v17 = vunpack.i.h.bf16 %v717_v16  ;;  %v718_v18 = vunpack.i.l.bf16 %v717_v16 }
  0x96   : > { %v412_v25 = vpop.permute.xlu0 %411 }
  0x98   : > { %v249_v19 = vpop.f32.mrf.mxu0 }
  0x99   : > { %v934_v21 = vadd.f32 %v733_v15, %v249_v19 }
  0x9b   : > { %v487_v22 = vmul.f32 %v485_v20, %v934_v21  ;;  %v341_v23 = vmul.f32 %v718_v18, %v934_v21  ;;  %v263_v24 = vmul.f32 %v719_v17, %v934_v21  ;;  %v414_v26 = vmul.f32 %v412_v25, %v934_v21 }
  0x9d   : > { %489 = vrot.lane.b32.xlu0 %v487_v22, %s816_s30  ;;  %343 = vrot.lane.b32.xlu1 %v341_v23, %s816_s30 }
  0x9e   : > { %265 = vrot.lane.b32.xlu2 %v263_v24, %s816_s30 }
  0xa6   : > { %416 = vrot.lane.b32.xlu2 %v414_v26, %s816_s30  ;;  %s214_s30 = scalar_lea.vmem [#allocation2], %s213_s15 }
  0xa7   : > { %s594_s7 = sshll.u32 %s214_s30, 4  ;;  %s595_s7 = int_to_ptr.vmem [resolvable:$true] %s594_s7 }
  0xf8   : > { %v266_v27 = vpop.permute.xlu2 %265 }
  0xf9   : > { %658 = vmatpush.xpose.msk.msra.mxu1 %vm228_vm0, %v266_v27 }
  0xfc   : > { %659 = vmatmul.msk.f32.vlgmr.msra.gmra.mxu1 %vm228_vm0, %v934_v21 }
 0x100   : > { %v417_v28 = vpop.permute.xlu2 %416 }
 0x101   : > { %664 = vmatpush.xpose.msk.msra.mxu3 %vm228_vm0, %v417_v28 }
 0x104   : > { %665 = vmatmul.msk.f32.vlgmr.msra.gmra.mxu3 %vm228_vm0, %v934_v21 }
 0x10f   : > { %v490_v29 = vpop.permute.xlu0 %489  ;;  %v344_v30 = vpop.permute.xlu1 %343 }
 0x110   : > { %661 = vmatpush.xpose.msk.msra.mxu2 %vm228_vm0, %v344_v30  ;;  %667 = vmatpush.xpose.msk.msrb.mxu1 %vm228_vm0, %v490_v29 }
 0x113   : > { %662 = vmatmul.msk.f32.vlgmr.msra.gmra.mxu2 %vm228_vm0, %v934_v21  ;;  %668 = vmatmul.msk.f32.vlgmr.msrb.gmra.mxu1 %vm228_vm0, %v934_v21 }
 0x179   : > { %v289_v31 = vpop.f32.mrf.mxu1 }
 0x17a   : > { %v293_v32 = vsel %vm292_vm11, %v289_v31, -inf }
 0x17b   : > { %294 = vmax.xlane.f32.xlu1 %v293_v32 }
 0x187   : > { %v437_v33 = vpop.f32.mrf.mxu3 }
 0x188   : > { %v440_v34 = vsel %vm292_vm11, %v437_v33, -inf }
 0x189   : > { %441 = vmax.xlane.f32.xlu0 %v440_v34 }
 0x190   : > { %v510_v37 = vpop.f32.mrf.mxu1 }
 0x191   : > { %v513_v38 = vsel %vm292_vm11, %v510_v37, -inf }
 0x196   : > { %v364_v35 = vpop.f32.mrf.mxu2 }
 0x197   : > { %v367_v36 = vsel %vm292_vm11, %v364_v35, -inf }
 0x198   : > { %368 = vmax.xlane.f32.xlu2 %v367_v36 }
 0x1a0   : > { %514 = vmax.xlane.f32.xlu2 %v513_v38 }
 0x1ee   : > { %v295_v39 = vpop.xlane.xlu1 %294 }
 0x1ef   : > { %v296_v40 = vsub.f32 %v289_v31, %v295_v39 }
 0x1f1   : > { %v297_v41 = vmul.f32 1.442695, %v296_v40 }
 0x1f3   : > { %734 = vpow2.f32 %v297_v41 }
 0x1f9   : > { %v735_v42 = vpop.eup %734 }
 0x1fa   : > { %v299_v43 = vsel %vm292_vm11, %v735_v42, 0.0 }
 0x1fb   : > { %300 = vadd.xlane.f32.xlu1 %v299_v43 }
 0x1fc   : > { %v442_v44 = vpop.xlane.xlu0 %441 }
 0x1fd   : > { %v443_v45 = vsub.f32 %v437_v33, %v442_v44 }
 0x1ff   : > { %v444_v46 = vmul.f32 1.442695, %v443_v45 }
 0x201   : > { %736 = vpow2.f32 %v444_v46 }
 0x207   : > { %v737_v47 = vpop.eup %736 }
 0x208   : > { %v446_v48 = vsel %vm292_vm11, %v737_v47, 0.0 }
 0x209   : > { %447 = vadd.xlane.f32.xlu0 %v446_v48 }
 0x20b   : > { %v369_v49 = vpop.xlane.xlu2 %368 }
 0x20c   : > { %v370_v50 = vsub.f32 %v364_v35, %v369_v49 }
 0x20e   : > { %v371_v51 = vmul.f32 1.442695, %v370_v50 }
 0x210   : > { %738 = vpow2.f32 %v371_v51  ;;  %v554_v51 = vld [vmem:[%s1033_s3 + $0x18] sm:$0xff] }
 0x211   : > { %573 = vmatpush.msrb.mxu2 %v554_v51 }
 0x213   : > { %v515_v52 = vpop.xlane.xlu2 %514 }
 0x214   : > { %v516_v53 = vsub.f32 %v510_v37, %v515_v52  ;;  %v553_v52 = vld [vmem:[%s1033_s3 + $0x10] sm:$0xff] }
 0x215   : > { %574 = vmatpush.msrb.mxu2 %v553_v52 }
 0x216   : > { %v739_v54 = vpop.eup %738  ;;  %v517_v55 = vmul.f32 1.442695, %v516_v53 }
 0x217   : > { %v373_v56 = vsel %vm292_vm11, %v739_v54, 0.0 }
 0x218   : > { %740 = vpow2.f32 %v517_v55  ;;  %374 = vadd.xlane.f32.xlu2 %v373_v56  ;;  %v552_v55 = vld [vmem:[%s1033_s3 + $0x8] sm:$0xff] }
 0x219   : > { %575 = vmatpush.msrb.mxu2 %v552_v55 }
 0x21b   : > { %576 = vmatpush.msrb.mxu2 %v551_v59 }
 0x21e   : > { %v741_v57 = vpop.eup %740 }
 0x21f   : > { %v519_v58 = vsel %vm292_vm11, %v741_v57, 0.0 }
 0x220   : > { %520 = vadd.xlane.f32.xlu1 %v519_v58 }
 0x230   : > { %721 = vrot.lane.b32.xlu2 %v720_v10, %s817_s6 }
 0x238   : > { %727 = vrot.lane.b32.xlu2 %v726_v14, %s817_s6 }
 0x26e   : > { %v301_v60 = vpop.xlane.xlu1 %300 }
 0x26f   : > { %742 = vrcp.f32 %v301_v60 }
 0x275   : > { %v743_v61 = vpop.eup %742 }
 0x276   : > { %v303_v62 = vmul.f32 %v743_v61, %v735_v42 }
 0x278   : > { %v304_v63 = vsel %vm292_vm11, %v303_v62, 0.0 }
 0x279   : > { %v305_v0 = vrot.slane %v304_v63, 4 }
 0x27b   : > { %v306_v1 = vadd.f32 %v305_v0, %v304_v63 }
 0x27c   : > { %v448_v4 = vpop.xlane.xlu0 %447 }
 0x27d   : > { %v307_v3 = vrot.slane %v306_v1, 2  ;;  %744 = vrcp.f32 %v448_v4 }
 0x27f   : > { %v308_v5 = vadd.f32 %v307_v3, %v306_v1 }
 0x281   : > { %v309_v6 = vrot.slane %v308_v5, 1 }
 0x283   : > { %v310_v7 = vadd.f32 %v309_v6, %v308_v5  ;;  %v745_v2 = vpop.eup %744 }
 0x284   : > { %v450_v9 = vmul.f32 %v745_v2, %v737_v47 }
 0x285   : > { %v311_v8 = vmul.f32 0.125, %v310_v7 }
 0x286   : > { %v451_v11 = vsel %vm292_vm11, %v450_v9, 0.0 }
 0x287   : > { %316 = vperm.xlu0 %725, %v311_v8   ;;  %v452_v13 = vrot.slane %v451_v11, 4 }
 0x289   : > { %v453_v18 = vadd.f32 %v452_v13, %v451_v11 }
 0x28b   : > { %v375_v10 = vpop.xlane.xlu2 %374  ;;  %v454_v23 = vrot.slane %v453_v18, 2 }
 0x28c   : > { %746 = vrcp.f32 %v375_v10 }
 0x28d   : > { %v455_v29 = vadd.f32 %v454_v23, %v453_v18 }
 0x28f   : > { %v456_v34 = vrot.slane %v455_v29, 1 }
 0x291   : > { %v457_v37 = vadd.f32 %v456_v34, %v455_v29 }
 0x292   : > { %v747_v12 = vpop.eup %746 }
 0x293   : > { %v377_v14 = vmul.f32 %v747_v12, %v739_v54  ;;  %v521_v15 = vpop.xlane.xlu1 %520  ;;  %v458_v40 = vmul.f32 0.125, %v457_v37  ;;  %v722_v41 = vpop.permute.xlu2 %721 }
 0x294   : > { %748 = vrcp.f32 %v521_v15  ;;  %v723_v43 = vunpack.i.l.bf16 %v722_v41  ;;  %v724_v49 = vunpack.i.h.bf16 %v722_v41 }
 0x295   : > { %v378_v16 = vsel %vm292_vm11, %v377_v14, 0.0 }
 0x296   : > { %v379_v17 = vrot.slane %v378_v16, 4  ;;  %v321_v46 = vmul.f32 %v723_v43, %v934_v21  ;;  %v395_v56 = vmul.f32 %v724_v49, %v934_v21 }
 0x298   : > { %v380_v19 = vadd.f32 %v379_v17, %v378_v16 }
 0x29a   : > { %v749_v20 = vpop.eup %748  ;;  %v381_v22 = vrot.slane %v380_v19, 2 }
 0x29b   : > { %v523_v24 = vmul.f32 %v749_v20, %v741_v57  ;;  %v728_v42 = vpop.permute.xlu2 %727 }
 0x29c   : > { %v382_v25 = vadd.f32 %v381_v22, %v380_v19  ;;  %v730_v45 = vunpack.i.h.bf16 %v728_v42  ;;  %v729_v62 = vunpack.i.l.bf16 %v728_v42 }
 0x29d   : > { %v524_v26 = vsel %vm292_vm11, %v523_v24, 0.0 }
 0x29e   : > { %v383_v27 = vrot.slane %v382_v25, 1  ;;  %v525_v28 = vrot.slane %v524_v26, 4  ;;  %v541_v50 = vmul.f32 %v730_v45, %v934_v21  ;;  %v468_v5 = vmul.f32 %v729_v62, %v934_v21 }
 0x2a0   : > { %v384_v30 = vadd.f32 %v383_v27, %v382_v25  ;;  %v526_v31 = vadd.f32 %v525_v28, %v524_v26 }
 0x2a2   : > { %v385_v32 = vmul.f32 0.125, %v384_v30  ;;  %v527_v33 = vrot.slane %v526_v31, 2 }
 0x2a4   : > { %390 = vperm.xlu1 %731, %v385_v32   ;;  %v528_v35 = vadd.f32 %v527_v33, %v526_v31  ;;  %v555_v31 = vld [vmem:[%s1034_s4] sm:$0x1] }
 0x2a6   : > { %v529_v36 = vrot.slane %v528_v35, 1 }
 0x2a8   : > { %v530_v38 = vadd.f32 %v529_v36, %v528_v35 }
 0x2aa   : > { %v531_v39 = vmul.f32 0.125, %v530_v38 }
 0x2ac   : > { %536 = vperm.xlu2 %732, %v531_v39   ;;  %463 = vperm.xlu1 %731, %v458_v40  }
 0x2f9   : > { %v317_v44 = vpop.permute.xlu0 %316 }
 0x2fa   : > { %v322_v47 = vmul.f32 %v321_v46, %v317_v44 }
 0x2fc   : > { %v324_v53 = vsel %vm323_vm12, %v322_v47, 0.0 }
 0x2fd   : > { %v325_v57 = vrot.slane %v324_v53, 4 }
 0x2ff   : > { %v326_v0 = vadd.f32 %v325_v57, %v324_v53 }
 0x301   : > { %v327_v6 = vrot.slane %v326_v0, 2 }
 0x303   : > { %v328_v12 = vadd.f32 %v327_v6, %v326_v0 }
 0x305   : > { %v329_v17 = vrot.slane %v328_v12, 1 }
 0x306   : > { %v537_v48 = vpop.permute.xlu2 %536 }
 0x307   : > { %v542_v54 = vmul.f32 %v541_v50, %v537_v48  ;;  %v330_v22 = vadd.f32 %v329_v17, %v328_v12 }
 0x309   : > { %v543_v60 = vsel %vm323_vm12, %v542_v54, 0.0 }
 0x30a   : > { %v544_v1 = vrot.slane %v543_v60, 4 }
 0x30c   : > { %v545_v7 = vadd.f32 %v544_v1, %v543_v60 }
 0x30e   : > { %v546_v13 = vrot.slane %v545_v7, 2 }
 0x310   : > { %v547_v18 = vadd.f32 %v546_v13, %v545_v7 }
 0x312   : > { %v548_v23 = vrot.slane %v547_v18, 1 }
 0x314   : > { %v549_v28 = vadd.f32 %v548_v23, %v547_v18 }
 0x316   : > { %v391_v58 = vpop.permute.xlu1 %390 }
 0x317   : > { %v396_v61 = vmul.f32 %v395_v56, %v391_v58 }
 0x319   : > { %v397_v63 = vsel %vm323_vm12, %v396_v61, 0.0 }
 0x31a   : > { %v398_v3 = vrot.slane %v397_v63, 4 }
 0x31c   : > { %v399_v4 = vadd.f32 %v398_v3, %v397_v63 }
 0x31e   : > { %v400_v8 = vrot.slane %v399_v4, 2  ;;  %v464_v2 = vpop.permute.xlu1 %463 }
 0x31f   : > { %v469_v9 = vmul.f32 %v468_v5, %v464_v2 }
 0x320   : > { %v401_v10 = vadd.f32 %v400_v8, %v399_v4 }
 0x321   : > { %v470_v11 = vsel %vm323_vm12, %v469_v9, 0.0 }
 0x322   : > { %v471_v14 = vrot.slane %v470_v11, 4  ;;  %v402_v15 = vrot.slane %v401_v10, 1 }
 0x324   : > { %v472_v16 = vadd.f32 %v471_v14, %v470_v11  ;;  %v403_v20 = vadd.f32 %v402_v15, %v401_v10 }
 0x326   : > { %v473_v19 = vrot.slane %v472_v16, 2  ;;  %v404_v26 = vadd.f32 %v403_v20, %v330_v22 }
 0x328   : > { %v474_v21 = vadd.f32 %v473_v19, %v472_v16 }
 0x32a   : > { %v475_v24 = vrot.slane %v474_v21, 1 }
 0x32c   : > { %v476_v25 = vadd.f32 %v475_v24, %v474_v21 }
 0x32e   : > { %v477_v27 = vadd.f32 %v476_v25, %v404_v26 }
 0x330   : > { %v550_v29 = vadd.f32 %v549_v28, %v477_v27 }
 0x332   : > { %557 = vrot.lane.b32.xlu1 %v550_v29, %s817_s6  ;;  %s584_s6 = scalar_lea.sflag [#allocation3], %s213_s15 }
 0x3a4   : > { %v558_v30 = vpop.permute.xlu1 %557 }
 0x3a5   : > { %669 = vmatmul.msk.f32.vlgmr.msrb.gmra.mxu2 %vm228_vm0, %v558_v30 }
 0x428   : > { %v578_v32 = vpop.f32.mrf.mxu2 }
 0x429   : > { %v579_v33 = vadd.f32 %v578_v32, %v555_v31 }
 0x42b   : > { %582 = vst.msk [vmem:[%s214_s30] sm:$0x1] %vm581_vm13, %v579_v33 }
 0x42c   : > { %777 = shalt.err (!%p774_p3)
}
 0x42d   : > { %672 = dma.vmem_to_hbm [thread:$0]  (%p886_p5), %s595_s7, 16, %s597_s8, %s584_s6  }
 0x42e PF: > { %p678_p4 = scmp.ge.s32.totalorder %s812_s21, 2  ;;  %s608_s15 = sand.u32 1, %s800_s18  }
 0x42f   : > { %s609_s16 = scalar_lea.sflag [#allocation3], %s608_s15 }
 0x430   : > { %p675_p7 = pnand %p678_p4, %p890_p6 }
 0x432   : > { %p676_p8 = pneg %p675_p7 }
 0x434   : > { %795 = dma.done.wait (%p676_p8), %s609_s16, 16  }
 0x435   : > { %797 = vsyncadd (%p676_p8), %s609_s16, 4294967280  ;;  %p15_p9 = scmp.ge.s32.totalorder %s873_s24, 4   ;;  %s1038_s18 = smov %s804_s19 }
 0x436   : > { %s1039_s19 = smov %s808_s20  ;;  %s1040_s20 = smov %s884_s27 }
 0x437   : > { %s1041_s21 = smov %s873_s24  ;;  %17 = sbr.rel (!%p15_p9) target bundleno = 3 (0x3), region = 75 }
 0x43c   :  { %614 = vsyncpa [#allocation3], 1 }
 0x43d   :  { %616 = vsyncpa [#allocation3 + $0x1], 1 }

</bundles_post_ra>
